<compile_context>
chip_gen: v6e
topology: v6e:2x2x1
jax: 0.10.0
libtpu: 0.0.40
codegen_flags: <defaults>
</compile_context>

<pallas_src>
import jax
import jax.numpy as jnp
from jax.experimental import pallas as pl
from jax.experimental.pallas import tpu as pltpu


def _round_up(x: int, m: int) -> int:
    return ((x + m - 1) // m) * m


def critic_kernel(x_ref, w1_ref, b1_ref, w2_ref, b2_ref, out_ref):
    # x_ref:  (TB, OBS)    w1_ref: (OBS, Hp)   b1_ref: (1, Hp)
    # w2_ref: (1, Hp)      b2_ref: (1, 1)      out_ref: (TB, 1)
    # hidden = relu(x @ W1 + b1)  -- single MXU matmul, f32 accumulation
    h = jnp.dot(x_ref[...], w1_ref[...], preferred_element_type=jnp.float32)
    h = jnp.maximum(h + b1_ref[...], 0.0)                 # VPU bias + ReLU
    # value = h @ W2 + b2 with N=1 -> VPU multiply + XLU lane reduce (no 2nd MXU pass)
    v = jnp.sum(h * w2_ref[...], axis=-1, keepdims=True) + b2_ref[...]
    out_ref[...] = v.astype(out_ref.dtype)


def critic_forward(x, w1, b1, w2, b2, *, tile_b=None):
    """x: (B, obs) f32; w1: (obs, H); b1: (1, H); w2: (H, 1); b2: (1, 1)."""
    B, obs = x.shape
    H = w1.shape[1]

    # --- pad hidden dim to a multiple of 128 (zero pad: numerically identical) ---
    Hp = max(128, _round_up(H, 128))
    if Hp != H:
        w1 = jnp.pad(w1, ((0, 0), (0, Hp - H)))
        b1 = jnp.pad(b1, ((0, 0), (0, Hp - H)))
        w2 = jnp.pad(w2, ((0, Hp - H), (0, 0)))
    w2_row = w2.reshape(1, Hp)  # lane-major row for the VPU multiply + reduce

    # --- one big batch tile (multiple of 8); pad batch instead of asserting ---
    if tile_b is None:
        tile_b = min(_round_up(B, 8), 512)
    tile_b = _round_up(max(tile_b, 8), 8)
    Bp = _round_up(B, tile_b)
    if Bp != B:
        x = jnp.pad(x, ((0, Bp - B), (0, 0)))

    grid = (Bp // tile_b,)
    cost = pl.CostEstimate(
        flops=2 * Bp * obs * Hp + 2 * Bp * Hp,
        transcendentals=0,
        bytes_accessed=(Bp * obs + obs * Hp + 2 * Hp + 1 + Bp) * 4,
    )

    out = pl.pallas_call(
        critic_kernel,
        out_shape=jax.ShapeDtypeStruct((Bp, 1), jnp.float32),
        grid_spec=pltpu.PrefetchScalarGridSpec(
            num_scalar_prefetch=0,
            grid=grid,
            in_specs=[
                pl.BlockSpec((tile_b, obs), lambda i: (i, 0)),  # x tile
                pl.BlockSpec((obs, Hp), lambda i: (0, 0)),      # W1 (resident)
                pl.BlockSpec((1, Hp), lambda i: (0, 0)),        # b1
                pl.BlockSpec((1, Hp), lambda i: (0, 0)),        # W2 as a row
                pl.BlockSpec((1, 1), lambda i: (0, 0)),         # b2
            ],
            out_specs=pl.BlockSpec((tile_b, 1), lambda i: (i, 0)),
        ),
        compiler_params=pltpu.CompilerParams(
            # single-step grid: megacore sharding buys nothing; at large B the
            # batch axis is trivially parallel.
            dimension_semantics=("arbitrary",) if grid[0] == 1 else ("parallel",),
        ),
        cost_estimate=cost,
    )(x, w1, b1, w2_row, b2)

    return out[:B]


def init_params(key, obs_size, hidden_size):
    # Deterministic init mimicking nn.Linear's U(-1/sqrt(fan_in), 1/sqrt(fan_in)).
    k1, k2, k3, k4 = jax.random.split(key, 4)
    lim1 = 1.0 / jnp.sqrt(obs_size)
    lim2 = 1.0 / jnp.sqrt(hidden_size)
    w1 = jax.random.uniform(k1, (obs_size, hidden_size), jnp.float32, -lim1, lim1)
    b1 = jax.random.uniform(k2, (1, hidden_size), jnp.float32, -lim1, lim1)
    w2 = jax.random.uniform(k3, (hidden_size, 1), jnp.float32, -lim2, lim2)
    b2 = jax.random.uniform(k4, (1, 1), jnp.float32, -lim2, lim2)
    return w1, b1, w2, b2


if __name__ == "__main__":
    key = jax.random.PRNGKey(0)
    kx, kp = jax.random.split(key)

    batch = 16
    obs_size = 16
    hidden_size = 100  # matches the PyTorch default

    x = jax.random.normal(kx, (batch, obs_size), jnp.float32)
    w1, b1, w2, b2 = init_params(kp, obs_size, hidden_size)

    value = critic_forward(x, w1, b1, w2, b2)
    value = jax.block_until_ready(value)

    # Pure-JAX reference check of the same math (unpadded H=100).
    ref = jnp.maximum(x @ w1 + b1, 0.0) @ w2 + b2
    assert value.shape == (batch, 1)
    assert jnp.allclose(value, ref, atol=1e-5, rtol=1e-5)

    print("KERNEL_OK")
</pallas_src>

<mosaic_0001>
module attributes {stable_mosaic.version = 11 : i64} {
  func.func @critic_kernel(%arg0: i32, %arg1: memref<16x16xf32, #tpu.memory_space<vmem>>, %arg2: memref<16x128xf32, #tpu.memory_space<vmem>>, %arg3: memref<1x128xf32, #tpu.memory_space<vmem>>, %arg4: memref<1x128xf32, #tpu.memory_space<vmem>>, %arg5: memref<1x1xf32, #tpu.memory_space<vmem>>, %arg6: memref<16x1xf32, #tpu.memory_space<vmem>>) attributes {dimension_semantics = [#tpu.dimension_semantics<arbitrary>], iteration_bounds = array<i64: 1>, scalar_prefetch = 0 : i64, scratch_operands = 0 : i64, tpu.core_type = #tpu.core_type<tc>, window_params = [{transform_indices = @transform_0, window_bounds = array<i64: 16, 16>}, {pipeline_mode = #tpu.pipeline_mode<synchronous>, transform_indices = @transform_1, window_bounds = array<i64: 16, 128>}, {pipeline_mode = #tpu.pipeline_mode<synchronous>, transform_indices = @transform_2, window_bounds = array<i64: 1, 128>}, {pipeline_mode = #tpu.pipeline_mode<synchronous>, transform_indices = @transform_3, window_bounds = array<i64: 1, 128>}, {pipeline_mode = #tpu.pipeline_mode<synchronous>, transform_indices = @transform_4, window_bounds = array<i64: 1, 1>}, {transform_indices = @transform_5, window_bounds = array<i64: 16, 1>}]} {
    %c0 = arith.constant 0 : index
    %c0_0 = arith.constant 0 : index
    %0 = vector.load %arg1[%c0, %c0_0] : memref<16x16xf32, #tpu.memory_space<vmem>>, vector<16x16xf32>
    %c0_1 = arith.constant 0 : index
    %c0_2 = arith.constant 0 : index
    %1 = vector.load %arg2[%c0_1, %c0_2] : memref<16x128xf32, #tpu.memory_space<vmem>>, vector<16x128xf32>
    %cst = arith.constant dense<0.000000e+00> : vector<16x128xf32>
    %2 = tpu.matmul %0, %1, %cst {dimension_numbers = #tpu.dot_dimension_numbers<[1], [0], [0], [1], [0, 0, 1, 1], [], []>} : vector<16x16xf32>, vector<16x128xf32>, vector<16x128xf32> -> vector<16x128xf32>
    %c0_3 = arith.constant 0 : index
    %c0_4 = arith.constant 0 : index
    %3 = vector.load %arg3[%c0_3, %c0_4] : memref<1x128xf32, #tpu.memory_space<vmem>>, vector<1x128xf32>
    %4 = vector.broadcast %3 : vector<1x128xf32> to vector<16x128xf32>
    %5 = arith.addf %2, %4 : vector<16x128xf32>
    %cst_5 = arith.constant 0.000000e+00 : f32
    %6 = vector.broadcast %cst_5 : f32 to vector<16x128xf32>
    %7 = arith.maximumf %5, %6 : vector<16x128xf32>
    %c0_6 = arith.constant 0 : index
    %c0_7 = arith.constant 0 : index
    %8 = vector.load %arg4[%c0_6, %c0_7] : memref<1x128xf32, #tpu.memory_space<vmem>>, vector<1x128xf32>
    %9 = vector.broadcast %8 : vector<1x128xf32> to vector<16x128xf32>
    %10 = arith.mulf %7, %9 : vector<16x128xf32>
    %cst_8 = arith.constant dense<0.000000e+00> : vector<16xf32>
    %11 = vector.multi_reduction <add>, %10, %cst_8 [1] : vector<16x128xf32> to vector<16xf32>
    %12 = vector.shape_cast %11 : vector<16xf32> to vector<16x1xf32>
    %c0_9 = arith.constant 0 : index
    %c0_10 = arith.constant 0 : index
    %13 = vector.load %arg5[%c0_9, %c0_10] : memref<1x1xf32, #tpu.memory_space<vmem>>, vector<1x1xf32>
    %14 = vector.broadcast %13 : vector<1x1xf32> to vector<16x1xf32>
    %15 = arith.addf %12, %14 : vector<16x1xf32>
    %c0_11 = arith.constant 0 : index
    %c0_12 = arith.constant 0 : index
    %16 = vector.load %arg6[%c0_11, %c0_12] : memref<16x1xf32, #tpu.memory_space<vmem>>, vector<16x1xf32>
    tpu.vector_store %arg6[%c0_11, %c0_12], %15 {strides = array<i32>} : memref<16x1xf32, #tpu.memory_space<vmem>>, vector<16x1xf32>,
    return
  }
  func.func @transform_0(%arg0: i32) -> (i32, i32) {
    %c0_i32 = arith.constant 0 : i32
    %c0_i32_0 = arith.constant 0 : i32
    return %arg0, %c0_i32 : i32, i32
  }
  func.func @transform_1(%arg0: i32) -> (i32, i32) {
    %c0_i32 = arith.constant 0 : i32
    %c0_i32_0 = arith.constant 0 : i32
    %c0_i32_1 = arith.constant 0 : i32
    return %c0_i32, %c0_i32_0 : i32, i32
  }
  func.func @transform_2(%arg0: i32) -> (i32, i32) {
    %c0_i32 = arith.constant 0 : i32
    %c0_i32_0 = arith.constant 0 : i32
    %c0_i32_1 = arith.constant 0 : i32
    return %c0_i32, %c0_i32_0 : i32, i32
  }
  func.func @transform_3(%arg0: i32) -> (i32, i32) {
    %c0_i32 = arith.constant 0 : i32
    %c0_i32_0 = arith.constant 0 : i32
    %c0_i32_1 = arith.constant 0 : i32
    return %c0_i32, %c0_i32_0 : i32, i32
  }
  func.func @transform_4(%arg0: i32) -> (i32, i32) {
    %c0_i32 = arith.constant 0 : i32
    %c0_i32_0 = arith.constant 0 : i32
    %c0_i32_1 = arith.constant 0 : i32
    return %c0_i32, %c0_i32_0 : i32, i32
  }
  func.func @transform_5(%arg0: i32) -> (i32, i32) {
    %c0_i32 = arith.constant 0 : i32
    %c0_i32_0 = arith.constant 0 : i32
    return %arg0, %c0_i32 : i32, i32
  }
}

</mosaic_0001>

<bundles_post_ra>
// kernel: tpu_custom_call.1
= control target key start
LH: loop header
LB: loop body
LE: loop exit
PB: predicated region body
PF: predicated region fallthrough
CT: control target
= control target key end

     0   :  { %s295_s0 = inlined_call_operand.hbm [shape: f32[16,16], index: 0, kind: input, shape index: {}]   ;;  %s296_s1 = inlined_call_operand.hbm [shape: f32[16,128], index: 1, kind: input, shape index: {}]   ;;  %s297_s2 = inlined_call_operand.vmem [shape: f32[1,128], index: 2, kind: input, shape index: {}]   ;;  %s298_s3 = inlined_call_operand.vmem [shape: f32[1,128], index: 3, kind: input, shape index: {}]   ;;  %s299_s4 = inlined_call_operand.<no memory space> [shape: f32[1,1], index: 4, kind: input, shape index: {}]   ;;  %s300_s5 = inlined_call_operand.vmem [shape: f32[16,1], index: 5, kind: output, shape index: {}]  }
   0x1   :  { %v10_v0 = vstv %s299_s4 }
   0x2   :  { %11 = vst [vmem:[#allocation2] sm:$0x1] %v10_v0 }
   0x3   :  { %12 = vsyncpa [#allocation4], 0 }
   0x4   :  { %13 = vsyncpa [#allocation6], 0  ;;  %s240_s20 = smov [#allocation3]  }
   0x5   :  { %s19_s21 = sshll.u32 %s240_s20, 4  ;;  %s20_s21 = int_to_ptr.vmem [resolvable:$true] %s19_s21 }
   0x6   :  { %s204_s22 = scalar_lea.vmem %s20_s21, 256  ;;  %p209_p1 = scmp.lt.s32.totalorder %s20_s21, %s20_s21 }
   0x7   :  { %p205_p0 = scmp.ne.s32.totalorder %s20_s21, %s204_s22  ;;  %p210_p2 = scmp.lt.s32.totalorder %s204_s22, %s204_s22 }
   0x9   :  { %p211_p3 = por %p210_p2, %p209_p1 }
   0xb   :  { %p212_p4 = pnand %p211_p3, %p205_p0 }
   0xd   :  { %215 = shalt.err (!%p212_p4)
}
   0xe   :  { %s241_s23 = smov 128   ;;  %s242_s24 = smov 8  }
   0xf   :  { %25 = dma.hbm_to_vmem [thread:$0]  %s295_s0, 256, %s20_s21, [#allocation4], %s241_s23, %s241_s23, %s242_s24  }
  0x10   :  { %s243_s4 = smov [#allocation5]  }
  0x11   :  { %s31_s27 = sshll.u32 %s243_s4, 4  ;;  %s32_s27 = int_to_ptr.vmem [resolvable:$true] %s31_s27 }
  0x12   :  { %s224_s28 = scalar_lea.vmem %s32_s27, 256  ;;  %p229_p6 = scmp.lt.s32.totalorder %s32_s27, %s32_s27 }
  0x13   :  { %p225_p5 = scmp.ne.s32.totalorder %s32_s27, %s224_s28  ;;  %p230_p7 = scmp.lt.s32.totalorder %s224_s28, %s224_s28 }
  0x15   :  { %p231_p8 = por %p230_p7, %p229_p6 }
  0x17   :  { %p232_p9 = pnand %p231_p8, %p225_p5 }
  0x19   :  { %235 = shalt.err (!%p232_p9)
}
  0x1a   :  { %37 = dma.hbm_to_vmem [thread:$0]  %s296_s1, 256, %s32_s27, [#allocation6], %s241_s23, %s241_s23, %s242_s24  }
  0x1b   :  { %236 = dma.done.wait [#allocation4], 256  }
  0x1c   :  { %237 = vsyncadd [#allocation4], 4294967040 }
  0x1d   :  { %238 = dma.done.wait [#allocation6], 256  }
  0x1e   :  { %239 = vsyncadd [#allocation6], 4294967040  ;;  %vm61_vm0 = vcmask 130048   ;;  %v53_v1 = vld [vmem:[#allocation5 + $0x8] sm:$0xff]  ;;  %v52_v2 = vld [vmem:[#allocation5] sm:$0xff]  ;;  %vm167_vm1 = vcmask 7168  }
  0x1f   :  { %v50_v3 = vld [vmem:[#allocation3] sm:$0xff]  ;;  %185 = vmatprep.subr.mxu0 %v53_v1  ;;  %v51_v4 = vld [vmem:[#allocation3 + $0x8] sm:$0xff]  ;;  %v176_v6 = vld [vmem:[%s297_s2] ss:$0 sm:$0xff] }
  0x20   :  { %189 = vmatprep.mubr.msk.f32.mxu0 %vm61_vm0, %v50_v3  ;;  %186 = vmatpush3.msra.mxu0 %v53_v1  ;;  %v179_v11 = vld [vmem:[%s298_s3] ss:$0 sm:$0xff] }
  0x21   :  { %187 = vmatprep.subr.mxu0 %v52_v2  ;;  %v180_v15 = vld [vmem:[#allocation2] ss:$0 sm:$0xff] }
  0x22   :  { %188 = vmatpush3.msra.mxu0 %v52_v2 }
  0x23   :  { %190 = vmatmul.mubr.msk.f32.vlgmr.msra.gmra.mxu0 %vm61_vm0, %v51_v4 }
  0xe3   :  { %v191_v5 = vpop.f32.mrf.mxu0 }
  0xe4   :  { %v140_v8 = vadd.f32 %v191_v5, %v176_v6 }
  0xe5   :  { %v134_v7 = vpop.f32.mrf.mxu0 }
  0xe6   :  { %v135_v9 = vadd.f32 %v176_v6, %v134_v7  ;;  %v144_v12 = vmax.f32 %v140_v8, 0.0 }
  0xe8   :  { %v143_v10 = vmax.f32 %v135_v9, 0.0  ;;  %v153_v14 = vmul.f32 %v179_v11, %v144_v12 }
  0xea   :  { %v152_v13 = vmul.f32 %v179_v11, %v143_v10 }
  0xec   :  { %154 = vadd.xlane.f32.xlu0 %v152_v13 }
  0xf0   :  { %156 = vadd.xlane.f32.xlu0 %v153_v14 }
 0x175   :  { %v155_v16 = vpop.xlane.xlu0 %154 }
 0x176   :  { %v165_v17 = vadd.f32 %v180_v15, %v155_v16 }
 0x178   :  { %168 = vst.msk [vmem:[%s300_s5] sm:$0xff] %vm167_vm1, %v165_v17 }
 0x179   :  { %v157_v18 = vpop.xlane.xlu0 %156 }
 0x17a   :  { %v166_v19 = vadd.f32 %v180_v15, %v157_v18 }
 0x17c   :  { %169 = vst.msk [vmem:[%s300_s5 + $0x8] sm:$0xff] %vm167_vm1, %v166_v19 }
 0x17d   :  { %174 = vsyncpa [#allocation4], 1 }
 0x17e   :  { %175 = vsyncpa [#allocation6], 1 }

</bundles_post_ra>
